<compile_context>
chip_gen: v6e
topology: v6e:2x2x1
jax: 0.10.0
libtpu: 0.0.40
codegen_flags: <defaults>
</compile_context>

<pallas_src>
import functools

import jax
import jax.numpy as jnp
from jax import lax
from jax.experimental import pallas as pl
from jax.experimental.pallas import tpu as pltpu


def _msi_embedder2_kernel(x_ref, w1t_ref, b1_ref, w2t_ref, b2_ref, o_ref,
                          *, chunk, n_chunks, unroll):
    # x_ref:   (C_in, tp)   channels on sublanes, pixels on lanes
    # w1t_ref: (64, C_in)   b1_ref: (64, 1)
    # w2t_ref: (3, 64)      b2_ref: (3, 1)
    # o_ref:   (3, tp)      lane-dense output tile
    # Weights / biases are tiny: load once into vregs, reuse across all chunks.
    w1t = w1t_ref[...]
    b1 = b1_ref[...]
    w2t = w2t_ref[...]
    b2 = b2_ref[...]

    def compute_chunk(c):
        off = pl.multiple_of(c * chunk, chunk)
        xc = x_ref[:, pl.ds(off, chunk)]                       # (C_in, chunk)
        # Layer 1: 1x1 conv + ReLU. Hidden stays in vregs (64, chunk).
        h = jnp.dot(w1t, xc, preferred_element_type=jnp.float32)
        h = jnp.maximum(h + b1, 0.0)
        # Layer 2: 1x1 conv + ReLU, straight from vregs.
        oc = jnp.dot(w2t, h, preferred_element_type=jnp.float32)
        oc = jnp.maximum(oc + b2, 0.0)
        o_ref[:, pl.ds(off, chunk)] = oc.astype(o_ref.dtype)

    if n_chunks == 1:
        compute_chunk(0)
    else:
        def body(c, carry):
            compute_chunk(c)
            return carry
        lax.fori_loop(0, n_chunks, body, 0, unroll=unroll)


def _round_up(x, m):
    return ((x + m - 1) // m) * m


def msi_embedder2_forward(x_nchw, w1, b1, w2, b2, *, tp=32768):
    """x_nchw: (N, C_in, H, W) float32.  Returns (N, 3, H, W) float32.

    w1: (C_in, 64), b1: (1, 64), w2: (64, 3), b2: (1, 3)  (matmul layout of
    the two 1x1 conv weights).
    """
    N, C, H, W = x_nchw.shape
    hidden = w1.shape[1]     # 64
    out_c = w2.shape[1]      # 3
    HW = H * W

    # NCHW -> (N, C, H*W): a free reshape (no transpose, no HBM copy).
    x = x_nchw.reshape(N, C, HW)

    # ---- Pixel tile (grid-level) -------------------------------------------
    if HW <= 128:
        # Block equals the full pixel extent (legal even if not 128-aligned).
        tp_eff = HW
    else:
        tp_eff = min(tp, _round_up(HW, 128))
        if N == 1:
            # v7x has 2 TensorCores/chip: guarantee >= 2 grid steps.
            half = _round_up(pl.cdiv(HW, 2), 128)
            tp_eff = min(tp_eff, half)

    # ---- In-kernel pixel chunk (keeps the hidden in vregs) ------------------
    chunk = tp_eff
    for c in (256, 128):
        if tp_eff % c == 0:
            chunk = c
            break
    n_chunks = tp_eff // chunk
    unroll = True if n_chunks <= 8 else 4

    # Transpose the tiny weights once so both matmuls are (out, in) @ (in, px).
    w1t = jnp.transpose(w1)            # (hidden, C)
    b1c = b1.reshape(hidden, 1)        # broadcast over pixels (lanes)
    w2t = jnp.transpose(w2)            # (out_c, hidden)
    b2c = b2.reshape(out_c, 1)

    # Non-divisible grid: Pallas masks the tail block, so no pad / slice.
    grid = (N, pl.cdiv(HW, tp_eff))

    kernel = functools.partial(_msi_embedder2_kernel,
                               chunk=chunk, n_chunks=n_chunks, unroll=unroll)

    out = pl.pallas_call(
        kernel,
        out_shape=jax.ShapeDtypeStruct((N, out_c, HW), jnp.float32),
        grid_spec=pltpu.PrefetchScalarGridSpec(
            num_scalar_prefetch=0,
            grid=grid,
            in_specs=[
                # x tile: (C, tp) slab of image n, pixels j*tp .. (j+1)*tp
                pl.BlockSpec((None, C, tp_eff), lambda n, j: (n, 0, j)),
                pl.BlockSpec((hidden, C), lambda n, j: (0, 0)),      # W1^T
                pl.BlockSpec((hidden, 1), lambda n, j: (0, 0)),      # b1
                pl.BlockSpec((out_c, hidden), lambda n, j: (0, 0)),  # W2^T
                pl.BlockSpec((out_c, 1), lambda n, j: (0, 0)),       # b2
            ],
            out_specs=pl.BlockSpec((None, out_c, tp_eff),
                                   lambda n, j: (n, 0, j)),
        ),
        compiler_params=pltpu.CompilerParams(
            dimension_semantics=("parallel", "parallel")),
    )(x, w1t, b1c, w2t, b2c)

    # (N, 3, HW) -> NCHW (free reshape, no slicing needed).
    return out.reshape(N, out_c, H, W)


def init_params(in_channels, key):
    """Deterministic synthetic init matching nn.Conv2d shapes (k=1 convs).

    Conv2d(C_in, 64, 1).weight has shape (64, C_in, 1, 1); stored here as a
    (C_in, 64) matmul weight. Same for the second conv (64 -> 3).
    """
    hidden, out_c = 64, 3
    k1, k2, k3, k4 = jax.random.split(key, 4)
    bnd1 = 1.0 / (in_channels ** 0.5)
    bnd2 = 1.0 / (hidden ** 0.5)
    w1 = jax.random.uniform(k1, (in_channels, hidden), jnp.float32, -bnd1, bnd1)
    b1 = jax.random.uniform(k2, (1, hidden), jnp.float32, -bnd1, bnd1)
    w2 = jax.random.uniform(k3, (hidden, out_c), jnp.float32, -bnd2, bnd2)
    b2 = jax.random.uniform(k4, (1, out_c), jnp.float32, -bnd2, bnd2)
    return w1, b1, w2, b2


def reference_forward(x_nchw, w1, b1, w2, b2):
    """Pure-JAX reference of the PyTorch forward (1x1 convs as matmuls)."""
    N, C, H, W = x_nchw.shape
    x = jnp.transpose(x_nchw, (0, 2, 3, 1)).reshape(-1, C)
    h = jnp.maximum(x @ w1 + b1, 0.0)
    o = jnp.maximum(h @ w2 + b2, 0.0)
    return jnp.transpose(o.reshape(N, H, W, -1), (0, 3, 1, 2))


if __name__ == "__main__":
    key = jax.random.PRNGKey(0)
    kx, kp = jax.random.split(key)

    N, C_in, H, W = 2, 4, 16, 16
    x = jax.random.normal(kx, (N, C_in, H, W), dtype=jnp.float32)
    w1, b1, w2, b2 = init_params(C_in, kp)

    out = msi_embedder2_forward(x, w1, b1, w2, b2)
    out = jax.block_until_ready(out)

    ref = reference_forward(x, w1, b1, w2, b2)
    assert out.shape == (N, 3, H, W), out.shape
    assert jnp.allclose(out, ref, atol=1e-5, rtol=1e-5), "mismatch vs reference"

    print("KERNEL_OK")
</pallas_src>

<mosaic_0001>
module attributes {stable_mosaic.version = 11 : i64} {
  func.func @_msi_embedder2_kernel(%arg0: i32, %arg1: i32, %arg2: memref<1x4x256xf32, #tpu.memory_space<vmem>>, %arg3: memref<64x4xf32, #tpu.memory_space<vmem>>, %arg4: memref<64x1xf32, #tpu.memory_space<vmem>>, %arg5: memref<3x64xf32, #tpu.memory_space<vmem>>, %arg6: memref<3x1xf32, #tpu.memory_space<vmem>>, %arg7: memref<1x3x256xf32, #tpu.memory_space<vmem>>) attributes {dimension_semantics = [#tpu.dimension_semantics<parallel>, #tpu.dimension_semantics<parallel>], iteration_bounds = array<i64: 2, 1>, scalar_prefetch = 0 : i64, scratch_operands = 0 : i64, tpu.core_type = #tpu.core_type<tc>, window_params = [{transform_indices = @transform_0, window_bounds = array<i64: 1, 4, 256>}, {pipeline_mode = #tpu.pipeline_mode<synchronous>, transform_indices = @transform_1, window_bounds = array<i64: 64, 4>}, {pipeline_mode = #tpu.pipeline_mode<synchronous>, transform_indices = @transform_2, window_bounds = array<i64: 64, 1>}, {pipeline_mode = #tpu.pipeline_mode<synchronous>, transform_indices = @transform_3, window_bounds = array<i64: 3, 64>}, {pipeline_mode = #tpu.pipeline_mode<synchronous>, transform_indices = @transform_4, window_bounds = array<i64: 3, 1>}, {transform_indices = @transform_5, window_bounds = array<i64: 1, 3, 256>}]} {
    %c0 = arith.constant 0 : index
    %c0_0 = arith.constant 0 : index
    %0 = vector.load %arg3[%c0, %c0_0] : memref<64x4xf32, #tpu.memory_space<vmem>>, vector<64x4xf32>
    %c0_1 = arith.constant 0 : index
    %c0_2 = arith.constant 0 : index
    %1 = vector.load %arg4[%c0_1, %c0_2] : memref<64x1xf32, #tpu.memory_space<vmem>>, vector<64x1xf32>
    %c0_3 = arith.constant 0 : index
    %c0_4 = arith.constant 0 : index
    %2 = vector.load %arg5[%c0_3, %c0_4] : memref<3x64xf32, #tpu.memory_space<vmem>>, vector<3x64xf32>
    %c0_5 = arith.constant 0 : index
    %c0_6 = arith.constant 0 : index
    %3 = vector.load %arg6[%c0_5, %c0_6] : memref<3x1xf32, #tpu.memory_space<vmem>>, vector<3x1xf32>
    %c0_i32 = arith.constant 0 : i32
    %4 = tpu.assume_multiple %c0_i32, 256 : i32
    %c0_7 = arith.constant 0 : index
    %c0_8 = arith.constant 0 : index
    %5 = arith.index_cast %4 : i32 to index
    %6 = vector.load %arg2[%c0_7, %c0_8, %5] : memref<1x4x256xf32, #tpu.memory_space<vmem>>, vector<1x4x256xf32>
    %7 = vector.shape_cast %6 : vector<1x4x256xf32> to vector<4x256xf32>
    %cst = arith.constant dense<0.000000e+00> : vector<64x256xf32>
    %8 = tpu.matmul %0, %7, %cst {dimension_numbers = #tpu.dot_dimension_numbers<[1], [0], [0], [1], [0, 0, 1, 1], [], []>} : vector<64x4xf32>, vector<4x256xf32>, vector<64x256xf32> -> vector<64x256xf32>
    %9 = vector.broadcast %1 : vector<64x1xf32> to vector<64x256xf32>
    %10 = arith.addf %8, %9 : vector<64x256xf32>
    %cst_9 = arith.constant 0.000000e+00 : f32
    %11 = vector.broadcast %cst_9 : f32 to vector<64x256xf32>
    %12 = arith.maximumf %10, %11 : vector<64x256xf32>
    %cst_10 = arith.constant dense<0.000000e+00> : vector<3x256xf32>
    %13 = tpu.matmul %2, %12, %cst_10 {dimension_numbers = #tpu.dot_dimension_numbers<[1], [0], [0], [1], [0, 0, 1, 1], [], []>} : vector<3x64xf32>, vector<64x256xf32>, vector<3x256xf32> -> vector<3x256xf32>
    %14 = vector.broadcast %3 : vector<3x1xf32> to vector<3x256xf32>
    %15 = arith.addf %13, %14 : vector<3x256xf32>
    %cst_11 = arith.constant 0.000000e+00 : f32
    %16 = vector.broadcast %cst_11 : f32 to vector<3x256xf32>
    %17 = arith.maximumf %15, %16 : vector<3x256xf32>
    %c0_12 = arith.constant 0 : index
    %c0_13 = arith.constant 0 : index
    %18 = arith.index_cast %4 : i32 to index
    %19 = vector.load %arg7[%c0_12, %c0_13, %18] : memref<1x3x256xf32, #tpu.memory_space<vmem>>, vector<1x3x256xf32>
    %20 = vector.shape_cast %19 : vector<1x3x256xf32> to vector<3x256xf32>
    %21 = vector.shape_cast %17 : vector<3x256xf32> to vector<1x3x256xf32>
    tpu.vector_store %arg7[%c0_12, %c0_13, %18], %21 {strides = array<i32>} : memref<1x3x256xf32, #tpu.memory_space<vmem>>, vector<1x3x256xf32>,
    return
  }
  func.func @transform_0(%arg0: i32, %arg1: i32) -> (i32, i32, i32) {
    %c0_i32 = arith.constant 0 : i32
    %c0_i32_0 = arith.constant 0 : i32
    return %arg0, %c0_i32, %arg1 : i32, i32, i32
  }
  func.func @transform_1(%arg0: i32, %arg1: i32) -> (i32, i32) {
    %c0_i32 = arith.constant 0 : i32
    %c0_i32_0 = arith.constant 0 : i32
    %c0_i32_1 = arith.constant 0 : i32
    return %c0_i32, %c0_i32_0 : i32, i32
  }
  func.func @transform_2(%arg0: i32, %arg1: i32) -> (i32, i32) {
    %c0_i32 = arith.constant 0 : i32
    %c0_i32_0 = arith.constant 0 : i32
    %c0_i32_1 = arith.constant 0 : i32
    return %c0_i32, %c0_i32_0 : i32, i32
  }
  func.func @transform_3(%arg0: i32, %arg1: i32) -> (i32, i32) {
    %c0_i32 = arith.constant 0 : i32
    %c0_i32_0 = arith.constant 0 : i32
    %c0_i32_1 = arith.constant 0 : i32
    return %c0_i32, %c0_i32_0 : i32, i32
  }
  func.func @transform_4(%arg0: i32, %arg1: i32) -> (i32, i32) {
    %c0_i32 = arith.constant 0 : i32
    %c0_i32_0 = arith.constant 0 : i32
    %c0_i32_1 = arith.constant 0 : i32
    return %c0_i32, %c0_i32_0 : i32, i32
  }
  func.func @transform_5(%arg0: i32, %arg1: i32) -> (i32, i32, i32) {
    %c0_i32 = arith.constant 0 : i32
    %c0_i32_0 = arith.constant 0 : i32
    return %arg0, %c0_i32, %arg1 : i32, i32, i32
  }
}

</mosaic_0001>

<bundles_post_ra>
// kernel: tpu_custom_call.1
= control target key start
LH: loop header
LB: loop body
LE: loop exit
PB: predicated region body
PF: predicated region fallthrough
CT: control target
= control target key end

     0   :  { %s767_s18 = smov 0   ;;  %s769_s19 = smov 0   ;;  %s869_s0 = inlined_call_operand.vmem [shape: f32[2,4,256], index: 0, kind: input, shape index: {}]   ;;  %s870_s1 = inlined_call_operand.vmem [shape: f32[64,4], index: 1, kind: input, shape index: {}]   ;;  %s871_s2 = inlined_call_operand.vmem [shape: f32[64,1], index: 2, kind: input, shape index: {}]   ;;  %s872_s3 = inlined_call_operand.vmem [shape: f32[3,64], index: 3, kind: input, shape index: {}]   ;;  %s873_s4 = inlined_call_operand.vmem [shape: f32[3,1], index: 4, kind: input, shape index: {}]   ;;  %s874_s5 = inlined_call_operand.vmem [shape: f32[2,3,256], index: 5, kind: output, shape index: {}]  }
   0x1   :  { %s771_s20 = smov 0  }
   0x2 LB: > { %s27_s21 = sadd.s32 1, %s729_s19  ;;  %p662_p0 = scmp.ge.s32.totalorder %s733_s20, 1  ;;  %s733_s20 = sphi %s771_s20, %s15_s20   ;;  %s729_s19 = sphi %s769_s19, %s876_s19   ;;  %s725_s18 = sphi %s767_s18, %s875_s18  }
   0x3   : > { %p29_p1 = scmp.ge.s32.totalorder %s27_s21, 2  ;;  %p208_p2 = scmp.lt.s32.totalorder %s733_s20, 3 }
   0x5   : > { %s878_s21 = smov (%p29_p1, %s27_s21), 0  ;;  %p209_p3 = pnand %p662_p0, %p208_p2 }
   0x6   : > { %p245_p4 = scmp.lt.s32.totalorder (!%p209_p3), %s725_s18, 1 }
   0x7   : > { %212 = sbr.rel (%p209_p3) target bundleno = 466 (0x1d2), region = 40 }
   0xc   : > { %v735_v0 = vmov 0.0   ;;  %s880_s18 = smov (!%p245_p4, %s725_s18), 1  ;;  %v736_v1 = vmov 0   ;;  %v277_v2 = vld [vmem:[%s871_s2 + $0x28] sm:$0xff]  ;;  %v279_v3 = vld [vmem:[%s871_s2 + $0x38] sm:$0xff]  ;;  %v276_v4 = vld [vmem:[%s871_s2 + $0x20] sm:$0xff] }
   0xd   : > { %419 = vmatprep.mubr.f32.mxu0 %v735_v0  ;;  %557 = vmatprep.mubr.f32.mxu1 %v735_v0  ;;  %s680_s26 = sshll.u32 %s880_s18, 3  ;;  %v278_v5 = vld [vmem:[%s871_s2 + $0x30] sm:$0xff]  ;;  %vm350_vm0 = vcmask 1043456   ;;  %v264_v8 = vld [vmem:[%s870_s1] sm:$0xff]  ;;  %vm325_vm1 = vcmask 31744   ;;  %v275_v10 = vld [vmem:[%s871_s2 + $0x18] sm:$0xff] }
   0xe   : > { %709 = vset.pattern.permute.xlu1 %v736_v1  ;;  %708 = vset.pattern.permute.xlu0 %v736_v1  ;;  %s252_s29 = scalar_lea.vmem %s869_s0, %s680_s26  ;;  %v274_v9 = vld [vmem:[%s871_s2 + $0x10] sm:$0xff]  ;;  %v265_v11 = vld [vmem:[%s870_s1 + $0x8] sm:$0xff]  ;;  %v272_v12 = vld [vmem:[%s871_s2] sm:$0xff]  ;;  %vm489_vm2 = vcmask 523264   ;;  %s262_s23 = scalar_lea.vmem %s874_s5, %s680_s26 }
   0xf   : > { %310 = vperm.xlu1 %709, %v277_v2   ;;  %320 = vperm.xlu0 %708, %v279_v3   ;;  %v282_v6 = vld [vmem:[%s252_s29] sm:$0xff]  ;;  %v273_v13 = vld [vmem:[%s871_s2 + $0x8] sm:$0xff]  ;;  %v266_v14 = vld [vmem:[%s870_s1 + $0x10] sm:$0xff] }
  0x10   : > { %v324_v7 = vcombine.high %v282_v6, %v282_v6  ;;  %v281_v15 = vld [vmem:[%s873_s4] sm:$0x7]  ;;  %v267_v16 = vld [vmem:[%s870_s1 + $0x18] sm:$0xff]  ;;  %v269_v18 = vld [vmem:[%s870_s1 + $0x28] sm:$0xff] }
  0x11   : > { %v268_v17 = vld [vmem:[%s870_s1 + $0x20] sm:$0xff]  ;;  %v270_v19 = vld [vmem:[%s870_s1 + $0x30] sm:$0xff]  ;;  %v271_v20 = vld [vmem:[%s870_s1 + $0x38] sm:$0xff] }
  0x12   : > { %667 = vmatprep.subr.msk.mxu0 %vm350_vm0, %v324_v7 }
  0x13   : > { %305 = vperm.xlu1 %709, %v276_v4   ;;  %315 = vperm.xlu0 %708, %v278_v5  }
  0x14   : > { %668 = vmatpush1.msk.msra.mxu0 %vm350_vm0, %v282_v6 }
  0x15   : > { %669 = vmatmul.mubr.msk.f32.vlgmr.msra.gmra.mxu0 %vm325_vm1, %v264_v8 }
  0x16   : > { %425 = vmatprep.mubr.f32.mxu0 %v735_v0 }
  0x17   : > { %295 = vperm.xlu1 %709, %v274_v9   ;;  %300 = vperm.xlu0 %708, %v275_v10  }
  0x19   : > { %670 = vmatmul.mubr.msk.f32.gmra.mxu0 %vm325_vm1, %v265_v11 }
  0x1a   : > { %431 = vmatprep.mubr.f32.mxu0 %v735_v0 }
  0x1b   : > { %285 = vperm.xlu1 %709, %v272_v12   ;;  %290 = vperm.xlu0 %708, %v273_v13   ;;  %v280_v13 = vld [vmem:[%s872_s3] sm:$0x7] }
  0x1d   : > { %671 = vmatmul.mubr.msk.f32.gmra.mxu0 %vm325_vm1, %v266_v14 }
  0x1e   : > { %437 = vmatprep.mubr.f32.mxu0 %v735_v0 }
  0x1f   : > { %486 = vperm.xlu0 %708, %v281_v15  }
  0x21   : > { %672 = vmatmul.mubr.msk.f32.gmra.mxu0 %vm325_vm1, %v267_v16 }
  0x22   : > { %443 = vmatprep.mubr.f32.mxu0 %v735_v0 }
  0x25   : > { %673 = vmatmul.mubr.msk.f32.gmra.mxu0 %vm325_vm1, %v268_v17 }
  0x26   : > { %449 = vmatprep.mubr.f32.mxu0 %v735_v0 }
  0x29   : > { %674 = vmatmul.mubr.msk.f32.gmra.mxu0 %vm325_vm1, %v269_v18 }
  0x2a   : > { %455 = vmatprep.mubr.f32.mxu0 %v735_v0 }
  0x2d   : > { %675 = vmatmul.mubr.msk.f32.gmra.mxu0 %vm325_vm1, %v270_v19 }
  0x2e   : > { %461 = vmatprep.mubr.f32.mxu0 %v735_v0 }
  0x31   : > { %676 = vmatmul.mubr.msk.f32.gmra.mxu0 %vm325_vm1, %v271_v20 }
  0x8a   : > { %v321_v32 = vpop.permute.xlu0 %320  ;;  %v311_v34 = vpop.permute.xlu1 %310 }
  0x8e   : > { %v316_v37 = vpop.permute.xlu0 %315  ;;  %v306_v39 = vpop.permute.xlu1 %305 }
  0x92   : > { %v301_v45 = vpop.permute.xlu0 %300  ;;  %v296_v50 = vpop.permute.xlu1 %295 }
  0x96   : > { %v291_v59 = vpop.permute.xlu0 %290  ;;  %v286_v0 = vpop.permute.xlu1 %285 }
  0x9a   : > { %v487_v14 = vpop.permute.xlu0 %486 }
  0xd5   : > { %v421_v21 = vpop.f32.mrf.mxu0 }
  0xd6   : > { %v422_v7 = vadd.f32 %v421_v21, %v286_v0 }
  0xd7   : > { %v423_v22 = vpop.f32.mrf.mxu0 }
  0xd8   : > { %v424_v5 = vadd.f32 %v423_v22, %v286_v0  ;;  %v468_v12 = vmax.f32 %v422_v7, 0.0 }
  0xd9   : > { %v427_v23 = vpop.f32.mrf.mxu0 }
  0xda   : > { %v428_v3 = vadd.f32 %v427_v23, %v291_v59  ;;  %v469_v11 = vmax.f32 %v424_v5, 0.0 }
  0xdb   : > { %v429_v24 = vpop.f32.mrf.mxu0 }
  0xdc   : > { %v430_v1 = vadd.f32 %v429_v24, %v291_v59  ;;  %v470_v10 = vmax.f32 %v428_v3, 0.0 }
  0xdd   : > { %v433_v25 = vpop.f32.mrf.mxu0 }
  0xde   : > { %v434_v62 = vadd.f32 %v433_v25, %v296_v50  ;;  %v471_v9 = vmax.f32 %v430_v1, 0.0 }
  0xdf   : > { %v435_v26 = vpop.f32.mrf.mxu0 }
  0xe0   : > { %v436_v60 = vadd.f32 %v435_v26, %v296_v50  ;;  %v472_v8 = vmax.f32 %v434_v62, 0.0 }
  0xe1   : > { %v439_v27 = vpop.f32.mrf.mxu0 }
  0xe2   : > { %v440_v57 = vadd.f32 %v439_v27, %v301_v45  ;;  %v473_v6 = vmax.f32 %v436_v60, 0.0 }
  0xe3   : > { %v441_v28 = vpop.f32.mrf.mxu0 }
  0xe4   : > { %v442_v55 = vadd.f32 %v441_v28, %v301_v45  ;;  %v474_v4 = vmax.f32 %v440_v57, 0.0 }
  0xe5   : > { %v445_v29 = vpop.f32.mrf.mxu0 }
  0xe6   : > { %v446_v53 = vadd.f32 %v445_v29, %v306_v39  ;;  %v475_v2 = vmax.f32 %v442_v55, 0.0 }
  0xe7   : > { %v447_v30 = vpop.f32.mrf.mxu0 }
  0xe8   : > { %v448_v51 = vadd.f32 %v447_v30, %v306_v39  ;;  %v476_v63 = vmax.f32 %v446_v53, 0.0 }
  0xe9   : > { %v451_v31 = vpop.f32.mrf.mxu0 }
  0xea   : > { %v452_v48 = vadd.f32 %v451_v31, %v311_v34  ;;  %v477_v61 = vmax.f32 %v448_v51, 0.0 }
  0xeb   : > { %v453_v33 = vpop.f32.mrf.mxu0 }
  0xec   : > { %v454_v46 = vadd.f32 %v453_v33, %v311_v34  ;;  %v478_v58 = vmax.f32 %v452_v48, 0.0 }
  0xed   : > { %v457_v35 = vpop.f32.mrf.mxu0 }
  0xee   : > { %v458_v44 = vadd.f32 %v457_v35, %v316_v37  ;;  %v479_v56 = vmax.f32 %v454_v46, 0.0 }
  0xef   : > { %v459_v36 = vpop.f32.mrf.mxu0 }
  0xf0   : > { %v460_v42 = vadd.f32 %v459_v36, %v316_v37  ;;  %v480_v54 = vmax.f32 %v458_v44, 0.0 }
  0xf1   : > { %v463_v38 = vpop.f32.mrf.mxu0 }
  0xf2   : > { %v464_v40 = vadd.f32 %v463_v38, %v321_v32  ;;  %v481_v52 = vmax.f32 %v460_v42, 0.0 }
  0xf3   : > { %v465_v41 = vpop.f32.mrf.mxu0 }
  0xf4   : > { %v466_v43 = vadd.f32 %v465_v41, %v321_v32  ;;  %v482_v49 = vmax.f32 %v464_v40, 0.0 }
  0xf6   : > { %v483_v47 = vmax.f32 %v466_v43, 0.0 }
  0xf8   : > { %509 = vmatprep.subr.mxu1 %v483_v47 }
  0xf9   : > { %510 = vmatpush1.msra.mxu1 %v482_v49 }
  0xfa   : > { %511 = vmatprep.subr.mxu1 %v481_v52 }
  0xfb   : > { %512 = vmatpush1.msra.mxu1 %v480_v54 }
  0xfc   : > { %513 = vmatprep.subr.mxu1 %v479_v56 }
  0xfd   : > { %514 = vmatpush1.msra.mxu1 %v478_v58 }
  0xfe   : > { %515 = vmatprep.subr.mxu1 %v477_v61 }
  0xff   : > { %516 = vmatpush1.msra.mxu1 %v476_v63 }
 0x100   : > { %517 = vmatprep.subr.mxu1 %v475_v2 }
 0x101   : > { %518 = vmatpush1.msra.mxu1 %v474_v4 }
 0x102   : > { %519 = vmatprep.subr.mxu1 %v473_v6 }
 0x103   : > { %520 = vmatpush1.msra.mxu1 %v472_v8 }
 0x104   : > { %521 = vmatprep.subr.mxu1 %v471_v9 }
 0x105   : > { %522 = vmatpush1.msra.mxu1 %v470_v10 }
 0x106   : > { %523 = vmatprep.subr.mxu1 %v469_v11 }
 0x107   : > { %524 = vmatpush1.msra.mxu1 %v468_v12 }
 0x108   : > { %677 = vmatmul.mubr.msk.f32.vlgmr.msra.gmra.mxu1 %vm489_vm2, %v280_v13 }
 0x1c8   : > { %v559_v15 = vpop.f32.mrf.mxu1 }
 0x1c9   : > { %v560_v16 = vadd.f32 %v559_v15, %v487_v14 }
 0x1ca   : > { %v561_v17 = vpop.f32.mrf.mxu1 }
 0x1cb   : > { %v562_v18 = vadd.f32 %v561_v17, %v487_v14  ;;  %v564_v19 = vmax.f32 %v560_v16, 0.0 }
 0x1cd   : > { %v565_v20 = vmax.f32 %v562_v18, 0.0 }
 0x1cf   : > { %v568_v21 = vcombine.low %v564_v19, %v565_v20 }
 0x1d1   : > { %570 = vst [vmem:[%s262_s23] sm:$0x77] %v568_v21 }
 0x1d2 PF: > { %s15_s20 = sadd.s32 1, %s733_s20   ;;  %s875_s18 = smov %s729_s19 }
 0x1d3   : > { %p12_p5 = scmp.ge.s32.totalorder %s15_s20, 4   ;;  %s876_s19 = smov %s878_s21 }
 0x1d5   :  { %14 = sbr.rel (!%p12_p5) target bundleno = 2 (0x2), region = 70 }

</bundles_post_ra>
